<compile_context>
chip_gen: v6e
topology: v6e:2x2x1
jax: 0.10.0
libtpu: 0.0.40
codegen_flags: <defaults>
</compile_context>

<pallas_src>
import jax
import jax.numpy as jnp
from jax.experimental import pallas as pl
from jax.experimental.pallas import tpu as pltpu  # noqa: F401  (TPU backend)

# ---------------- model hyper-params (small, consistent with the module) ----
VOCAB = 21128
E = 32      # opt.embedding_dim
C = 8       # opt.class_num
B = 2       # batch
L = 8       # sequence length


def caml_kernel(xcat_ref, wconv_ref, bconv_ref, uwt_ref, wct_ref, bcls_ref, o_ref):
    # xcat_ref : (B*L, 3E)  im2col'd embeddings, row (b,t) = [x[t-1] | x[t] | x[t+1]]
    # wconv_ref: (3E, E)    conv weight flattened over (tap, in_ch), cols = out_ch
    # bconv_ref: (1, E)
    # uwt_ref  : (E, C)     U.weight^T
    # wct_ref  : (E, C)     classifier.weight^T
    # bcls_ref : (1, C)
    # o_ref    : (B, C)

    # conv1d(k=3, pad=1) as ONE matmul with K = 3E, then tanh.
    h = jnp.tanh(
        jnp.dot(xcat_ref[...], wconv_ref[...], preferred_element_type=jnp.float32)
        + bconv_ref[...])                                           # (B*L, E)

    # Label-attention scores and fused classifier projection (both MXU).
    scores = jnp.dot(h, uwt_ref[...], preferred_element_type=jnp.float32)  # (B*L, C)
    m = jnp.dot(h, wct_ref[...], preferred_element_type=jnp.float32)       # (B*L, C)

    # Per-batch softmax over L (axis=1 after splitting the row dim).
    scores3 = scores.reshape(B, L, C)                                # (B, L, C)
    m3 = m.reshape(B, L, C)                                          # (B, L, C)

    scores3 = scores3 - jnp.max(scores3, axis=1, keepdims=True)
    p = jnp.exp(scores3)
    inv = pl.reciprocal(jnp.sum(p, axis=1, keepdims=True), approx=True)
    alpha = p * inv                                                  # (B, L, C)

    # out[b, c] = sum_l alpha[b, c, l] * (h[b, l, :] . Wcls[c, :]) + b_cls[c]
    o_ref[...] = jnp.sum(alpha * m3, axis=1) + bcls_ref[...]         # (B, C)


def caml_forward(X, emb_table, w_conv, b_conv, u_w, w_cls, b_cls):
    # Glue: embedding lookup + zero padding + im2col for the k=3, pad=1 conv.
    # TODO(synk): dropout is identity (inference mode); no RNG mask applied.
    embed = emb_table[X]                                     # (B, L, E)
    embed_pad = jnp.pad(embed, ((0, 0), (1, 1), (0, 0)))     # (B, L+2, E)
    xcat = jnp.concatenate(
        [embed_pad[:, 0:L], embed_pad[:, 1:L + 1], embed_pad[:, 2:L + 2]],
        axis=-1).reshape(B * L, 3 * E)                       # (B*L, 3E)

    # Pre-transpose all weights so the kernel never transposes.
    # w_conv is (E_out, E_in, 3); flatten to rows ordered (tap, in) -> (3E, E_out).
    wconv_flat = jnp.transpose(w_conv, (2, 1, 0)).reshape(3 * E, E)
    bconv_2d = b_conv.reshape(1, E)
    uw_t = u_w.T                                             # (E, C)
    wcls_t = w_cls.T                                         # (E, C)
    bcls_2d = b_cls.reshape(1, C)

    # Single pallas_call, no grid: whole batch in one step, one (B, C) store.
    out = pl.pallas_call(
        caml_kernel,
        out_shape=jax.ShapeDtypeStruct((B, C), jnp.float32),
    )(xcat, wconv_flat, bconv_2d, uw_t, wcls_t, bcls_2d)
    return out


def reference_forward(X, emb_table, w_conv, b_conv, u_w, w_cls, b_cls):
    embed = emb_table[X]                                     # (B, L, E)
    xpad = jnp.pad(embed, ((0, 0), (1, 1), (0, 0)))
    conv = (jnp.einsum('blc,oc->blo', xpad[:, 0:L], w_conv[:, :, 0])
            + jnp.einsum('blc,oc->blo', xpad[:, 1:L + 1], w_conv[:, :, 1])
            + jnp.einsum('blc,oc->blo', xpad[:, 2:L + 2], w_conv[:, :, 2])
            + b_conv)                                        # (B, L, E)
    h = jnp.tanh(conv)
    scores = jnp.einsum('ce,ble->bcl', u_w, h)               # (B, C, L)
    alpha = jax.nn.softmax(scores, axis=2)
    attn = jnp.einsum('bcl,ble->bce', alpha, h)              # (B, C, E)
    return jnp.sum(attn * w_cls[None], axis=2) + b_cls[None]


def xavier_uniform(key, shape):
    fan_out, fan_in = shape
    lim = jnp.sqrt(6.0 / (fan_in + fan_out))
    return jax.random.uniform(key, shape, jnp.float32, -lim, lim)


if __name__ == "__main__":
    key = jax.random.PRNGKey(0)
    k_emb, k_cw, k_cb, k_u, k_cls, k_x = jax.random.split(key, 6)

    # Parameters (deterministic, shapes per Model.__init__).
    emb_table = jax.random.normal(k_emb, (VOCAB, E), jnp.float32)
    emb_table = emb_table.at[0].set(0.0)                     # padding_idx=0
    w_conv = jax.random.uniform(k_cw, (E, E, 3), jnp.float32,
                                -jnp.sqrt(1.0 / (E * 3)), jnp.sqrt(1.0 / (E * 3)))
    b_conv = jax.random.uniform(k_cb, (E,), jnp.float32,
                                -jnp.sqrt(1.0 / (E * 3)), jnp.sqrt(1.0 / (E * 3)))
    u_w = xavier_uniform(k_u, (C, E))                        # U.weight (bias unused)
    w_cls = xavier_uniform(k_cls, (C, E))                    # classifier.weight
    b_cls = jnp.zeros((C,), jnp.float32)                     # classifier.bias

    # Input token ids.
    X = jax.random.randint(k_x, (B, L), 0, VOCAB, dtype=jnp.int32)

    out = caml_forward(X, emb_table, w_conv, b_conv, u_w, w_cls, b_cls)
    out = jax.block_until_ready(out)

    ref = reference_forward(X, emb_table, w_conv, b_conv, u_w, w_cls, b_cls)
    assert out.shape == (B, C)
    # Slightly relaxed tolerance: softmax denom uses EUP approximate reciprocal.
    assert jnp.allclose(out, ref, atol=2e-3, rtol=2e-3), \
        f"max abs err {jnp.max(jnp.abs(out - ref))}"

    print("KERNEL_OK")
</pallas_src>

<mosaic_0001>
module attributes {stable_mosaic.version = 11 : i64} {
  func.func @caml_kernel(%arg0: memref<16x96xf32, #tpu.memory_space<vmem>>, %arg1: memref<96x32xf32, #tpu.memory_space<vmem>>, %arg2: memref<1x32xf32, #tpu.memory_space<vmem>>, %arg3: memref<32x8xf32, #tpu.memory_space<vmem>>, %arg4: memref<32x8xf32, #tpu.memory_space<vmem>>, %arg5: memref<1x8xf32, #tpu.memory_space<vmem>>, %arg6: memref<2x8xf32, #tpu.memory_space<vmem>>) attributes {dimension_semantics = [], scalar_prefetch = 0 : i64, scratch_operands = 0 : i64, tpu.core_type = #tpu.core_type<tc>} {
    %c0 = arith.constant 0 : index
    %c0_0 = arith.constant 0 : index
    %0 = vector.load %arg0[%c0, %c0_0] : memref<16x96xf32, #tpu.memory_space<vmem>>, vector<16x96xf32>
    %c0_1 = arith.constant 0 : index
    %c0_2 = arith.constant 0 : index
    %1 = vector.load %arg1[%c0_1, %c0_2] : memref<96x32xf32, #tpu.memory_space<vmem>>, vector<96x32xf32>
    %cst = arith.constant dense<0.000000e+00> : vector<16x32xf32>
    %2 = tpu.matmul %0, %1, %cst {dimension_numbers = #tpu.dot_dimension_numbers<[1], [0], [0], [1], [0, 0, 1, 1], [], []>} : vector<16x96xf32>, vector<96x32xf32>, vector<16x32xf32> -> vector<16x32xf32>
    %c0_3 = arith.constant 0 : index
    %c0_4 = arith.constant 0 : index
    %3 = vector.load %arg2[%c0_3, %c0_4] : memref<1x32xf32, #tpu.memory_space<vmem>>, vector<1x32xf32>
    %4 = vector.broadcast %3 : vector<1x32xf32> to vector<16x32xf32>
    %5 = arith.addf %2, %4 : vector<16x32xf32>
    %6 = math.tanh %5 : vector<16x32xf32>
    %c0_5 = arith.constant 0 : index
    %c0_6 = arith.constant 0 : index
    %7 = vector.load %arg3[%c0_5, %c0_6] : memref<32x8xf32, #tpu.memory_space<vmem>>, vector<32x8xf32>
    %cst_7 = arith.constant dense<0.000000e+00> : vector<16x8xf32>
    %8 = tpu.matmul %6, %7, %cst_7 {dimension_numbers = #tpu.dot_dimension_numbers<[1], [0], [0], [1], [0, 0, 1, 1], [], []>} : vector<16x32xf32>, vector<32x8xf32>, vector<16x8xf32> -> vector<16x8xf32>
    %c0_8 = arith.constant 0 : index
    %c0_9 = arith.constant 0 : index
    %9 = vector.load %arg4[%c0_8, %c0_9] : memref<32x8xf32, #tpu.memory_space<vmem>>, vector<32x8xf32>
    %cst_10 = arith.constant dense<0.000000e+00> : vector<16x8xf32>
    %10 = tpu.matmul %6, %9, %cst_10 {dimension_numbers = #tpu.dot_dimension_numbers<[1], [0], [0], [1], [0, 0, 1, 1], [], []>} : vector<16x32xf32>, vector<32x8xf32>, vector<16x8xf32> -> vector<16x8xf32>
    %11 = vector.shape_cast %8 : vector<16x8xf32> to vector<2x8x8xf32>
    %12 = vector.shape_cast %10 : vector<16x8xf32> to vector<2x8x8xf32>
    %cst_11 = arith.constant dense<0xFF800000> : vector<2x8xf32>
    %13 = vector.multi_reduction <maximumf>, %11, %cst_11 [1] : vector<2x8x8xf32> to vector<2x8xf32>
    %14 = vector.shape_cast %13 : vector<2x8xf32> to vector<2x1x8xf32>
    %15 = vector.broadcast %14 : vector<2x1x8xf32> to vector<2x8x8xf32>
    %16 = arith.subf %11, %15 : vector<2x8x8xf32>
    %17 = math.exp %16 : vector<2x8x8xf32>
    %cst_12 = arith.constant dense<0.000000e+00> : vector<2x8xf32>
    %18 = vector.multi_reduction <add>, %17, %cst_12 [1] : vector<2x8x8xf32> to vector<2x8xf32>
    %19 = vector.shape_cast %18 : vector<2x8xf32> to vector<2x1x8xf32>
    %20 = tpu.reciprocal %19 {approx = true} : vector<2x1x8xf32> -> vector<2x1x8xf32>
    %21 = vector.broadcast %20 : vector<2x1x8xf32> to vector<2x8x8xf32>
    %22 = arith.mulf %17, %21 : vector<2x8x8xf32>
    %23 = arith.mulf %22, %12 : vector<2x8x8xf32>
    %cst_13 = arith.constant dense<0.000000e+00> : vector<2x8xf32>
    %24 = vector.multi_reduction <add>, %23, %cst_13 [1] : vector<2x8x8xf32> to vector<2x8xf32>
    %c0_14 = arith.constant 0 : index
    %c0_15 = arith.constant 0 : index
    %25 = vector.load %arg5[%c0_14, %c0_15] : memref<1x8xf32, #tpu.memory_space<vmem>>, vector<1x8xf32>
    %26 = vector.broadcast %25 : vector<1x8xf32> to vector<2x8xf32>
    %27 = arith.addf %24, %26 : vector<2x8xf32>
    %c0_16 = arith.constant 0 : index
    %c0_17 = arith.constant 0 : index
    %28 = vector.load %arg6[%c0_16, %c0_17] : memref<2x8xf32, #tpu.memory_space<vmem>>, vector<2x8xf32>
    tpu.vector_store %arg6[%c0_16, %c0_17], %27 {strides = array<i32>} : memref<2x8xf32, #tpu.memory_space<vmem>>, vector<2x8xf32>,
    return
  }
}

</mosaic_0001>

<bundles_post_ra>
// kernel: tpu_custom_call.1
= control target key start
LH: loop header
LB: loop body
LE: loop exit
PB: predicated region body
PF: predicated region fallthrough
CT: control target
= control target key end

     0   :  { %vm45_vm0 = vcmask 785408   ;;  %s621_s0 = inlined_call_operand.vmem [shape: f32[16,96], index: 0, kind: input, shape index: {}]   ;;  %s622_s1 = inlined_call_operand.vmem [shape: f32[96,32], index: 1, kind: input, shape index: {}]   ;;  %s623_s2 = inlined_call_operand.vmem [shape: f32[1,32], index: 2, kind: input, shape index: {}]   ;;  %s624_s3 = inlined_call_operand.vmem [shape: f32[32,8], index: 3, kind: input, shape index: {}]   ;;  %s625_s4 = inlined_call_operand.vmem [shape: f32[32,8], index: 4, kind: input, shape index: {}]   ;;  %s626_s5 = inlined_call_operand.vmem [shape: f32[1,8], index: 5, kind: input, shape index: {}]   ;;  %s627_s6 = inlined_call_operand.hbm [shape: f32[2,8], index: 6, kind: output, shape index: {}]  }
   0x1   :  { %v37_v0 = vld [vmem:[%s622_s1 + $0x58] sm:$0xff]  ;;  %v36_v1 = vld [vmem:[%s622_s1 + $0x50] sm:$0xff]  ;;  %v35_v2 = vld [vmem:[%s622_s1 + $0x48] sm:$0xff] }
   0x2   :  { %414 = vmatprep.subr.mxu0 %v37_v0  ;;  %v34_v3 = vld [vmem:[%s622_s1 + $0x40] sm:$0xff] }
   0x3   :  { %415 = vmatpush3.msra.mxu0 %v37_v0  ;;  %v24_v4 = vld [vmem:[%s621_s0] sm:$0xff] }
   0x4   :  { %416 = vmatprep.subr.mxu0 %v36_v1 }
   0x5   :  { %417 = vmatpush3.msra.mxu0 %v36_v1 }
   0x6   :  { %11 = vsyncpa [#allocation3], 0  ;;  %418 = vmatprep.subr.mxu0 %v35_v2  ;;  %438 = vmatprep.mubr.msk.f32.mxu0 %vm45_vm0, %v24_v4  ;;  %v33_v5 = vld [vmem:[%s622_s1 + $0x38] sm:$0xff]  ;;  %v32_v6 = vld [vmem:[%s622_s1 + $0x30] sm:$0xff]  ;;  %vm133_vm1 = vcmask 261120   ;;  %vm294_vm2 = vcmask 64512  }
   0x7   :  { %419 = vmatpush3.msra.mxu0 %v35_v2  ;;  %v31_v7 = vld [vmem:[%s622_s1 + $0x28] sm:$0xff]  ;;  %v30_v8 = vld [vmem:[%s622_s1 + $0x20] sm:$0xff]  ;;  %v29_v9 = vld [vmem:[%s622_s1 + $0x18] sm:$0xff]  ;;  %s498_s16 = smov [#allocation2]   ;;  %vm361_vm3 = vcmask 1041409   ;;  %vm364_vm4 = vcmask 58368  }
   0x8   :  { %420 = vmatprep.subr.mxu0 %v34_v3  ;;  %v28_v10 = vld [vmem:[%s622_s1 + $0x10] sm:$0xff]  ;;  %v27_v11 = vld [vmem:[%s622_s1 + $0x8] sm:$0xff]  ;;  %v26_v12 = vld [vmem:[%s622_s1] sm:$0xff]  ;;  %s372_s17 = sshll.u32 %s498_s16, 4  ;;  %s373_s17 = int_to_ptr.vmem [resolvable:$true] %s372_s17 }
   0x9   :  { %421 = vmatpush3.msra.mxu0 %v34_v3  ;;  %v25_v13 = vld [vmem:[%s621_s0 + $0x8] sm:$0xff]  ;;  %v132_v14 = vld [vmem:[%s624_s3 + $0x18] sm:$0xff]  ;;  %v131_v15 = vld [vmem:[%s624_s3 + $0x10] sm:$0xff]  ;;  %s476_s18 = scalar_lea.vmem %s373_s17, 32  ;;  %p481_p1 = scmp.lt.s32.totalorder %s373_s17, %s373_s17 }
   0xa   :  { %422 = vmatprep.subr.mxu0 %v33_v5  ;;  %441 = vmatprep.subr.mxu1 %v132_v14  ;;  %v130_v16 = vld [vmem:[%s624_s3 + $0x8] sm:$0xff]  ;;  %v129_v17 = vld [vmem:[%s624_s3] sm:$0xff]  ;;  %v218_v18 = vld [vmem:[%s625_s4 + $0x18] sm:$0xff]  ;;  %p477_p0 = scmp.ne.s32.totalorder %s373_s17, %s476_s18  ;;  %p482_p2 = scmp.lt.s32.totalorder %s476_s18, %s476_s18 }
   0xb   :  { %423 = vmatpush3.msra.mxu0 %v33_v5  ;;  %442 = vmatpush3.msra.mxu1 %v132_v14  ;;  %v380_v19 = vld [vmem:[%s623_s2] ss:$0 sm:$0xff]  ;;  %v217_v26 = vld [vmem:[%s625_s4 + $0x10] sm:$0xff]  ;;  %v216_v27 = vld [vmem:[%s625_s4 + $0x8] sm:$0xff] }
   0xc   :  { %424 = vmatprep.subr.mxu0 %v32_v6  ;;  %443 = vmatprep.subr.mxu1 %v131_v15  ;;  %v215_v28 = vld [vmem:[%s625_s4] sm:$0xff]  ;;  %p483_p3 = por %p482_p2, %p481_p1 }
   0xd   :  { %425 = vmatpush3.msra.mxu0 %v32_v6  ;;  %444 = vmatpush3.msra.mxu1 %v131_v15 }
   0xe   :  { %426 = vmatprep.subr.mxu0 %v31_v7  ;;  %445 = vmatprep.subr.mxu1 %v130_v16  ;;  %p484_p4 = pnand %p483_p3, %p477_p0 }
   0xf   :  { %427 = vmatpush3.msra.mxu0 %v31_v7  ;;  %446 = vmatpush3.msra.mxu1 %v130_v16 }
  0x10   :  { %428 = vmatprep.subr.mxu0 %v30_v8  ;;  %447 = vmatprep.subr.mxu1 %v129_v17 }
  0x11   :  { %429 = vmatpush3.msra.mxu0 %v30_v8  ;;  %448 = vmatpush3.msra.mxu1 %v129_v17 }
  0x12   :  { %430 = vmatprep.subr.mxu0 %v29_v9  ;;  %452 = vmatprep.subr.mxu1 %v218_v18 }
  0x13   :  { %431 = vmatpush3.msra.mxu0 %v29_v9 }
  0x14   :  { %432 = vmatprep.subr.mxu0 %v28_v10 }
  0x15   :  { %433 = vmatpush3.msra.mxu0 %v28_v10 }
  0x16   :  { %434 = vmatprep.subr.mxu0 %v27_v11 }
  0x17   :  { %435 = vmatpush3.msra.mxu0 %v27_v11 }
  0x18   :  { %436 = vmatprep.subr.mxu0 %v26_v12 }
  0x19   :  { %437 = vmatpush3.msra.mxu0 %v26_v12 }
  0x1a   :  { %439 = vmatmul.mubr.msk.f32.vlgmr.msra.gmra.mxu0 %vm45_vm0, %v25_v13 }
  0xda   :  { %v440_v20 = vpop.f32.mrf.mxu0 }
  0xdb   :  { %v124_v21 = vadd.f32 %v440_v20, %v380_v19  ;;  %v387_v20 = vld [vmem:[%s626_s5] ss:$0 sm:$0xff] }
  0xdc   :  { %v118_v22 = vpop.f32.mrf.mxu0 }
  0xdd   :  { %v119_v23 = vadd.f32 %v380_v19, %v118_v22 }
  0xdf   :  { %464 = vtanh.f32 %v119_v23 }
  0xe0   :  { %466 = vtanh.f32 %v124_v21 }
  0xec   :  { %v465_v24 = vpop.eup %464 }
  0xed   :  { %v467_v25 = vpop.eup %466  ;;  %449 = vmatprep.mubr.msk.f32.mxu1 %vm133_vm1, %v465_v24 }
  0xee   :  { %450 = vmatmul.mubr.msk.f32.vlgmr.msra.gmra.mxu1 %vm133_vm1, %v467_v25 }
  0xef   :  { %453 = vmatpush3.msra.mxu1 %v218_v18  ;;  %460 = vmatprep.mubr.msk.f32.mxu1 %vm133_vm1, %v465_v24 }
  0xf0   :  { %454 = vmatprep.subr.mxu1 %v217_v26 }
  0xf1   :  { %455 = vmatpush3.msra.mxu1 %v217_v26 }
  0xf2   :  { %456 = vmatprep.subr.mxu1 %v216_v27 }
  0xf3   :  { %457 = vmatpush3.msra.mxu1 %v216_v27 }
  0xf4   :  { %458 = vmatprep.subr.mxu1 %v215_v28 }
  0xf5   :  { %459 = vmatpush3.msra.mxu1 %v215_v28 }
  0xf6   :  { %461 = vmatmul.mubr.msk.f32.vlgmr.msra.gmra.mxu1 %vm133_vm1, %v467_v25 }
 0x1ae   :  { %v451_v29 = vpop.f32.mrf.mxu1 }
 0x1af   :  { %v302_v30 = vsel %vm294_vm2, %v451_v29, -inf }
 0x1b0   :  { %v303_v31 = vrot.slane %v302_v30, 4  ;;  %v206_v32 = vpop.f32.mrf.mxu1 }
 0x1b1   :  { %v295_v33 = vsel %vm294_vm2, %v206_v32, -inf }
 0x1b2   :  { %v304_v34 = vmax.f32 %v302_v30, %v303_v31  ;;  %v296_v35 = vrot.slane %v295_v33, 4 }
 0x1b4   :  { %v305_v36 = vrot.slane %v304_v34, 2  ;;  %v297_v37 = vmax.f32 %v295_v33, %v296_v35 }
 0x1b6   :  { %v306_v38 = vmax.f32 %v304_v34, %v305_v36  ;;  %v298_v39 = vrot.slane %v297_v37, 2  ;;  %v462_v2 = vpop.f32.mrf.mxu1 }
 0x1b8   :  { %v307_v40 = vrot.slane %v306_v38, 1  ;;  %v299_v41 = vmax.f32 %v297_v37, %v298_v39  ;;  %v285_v7 = vpop.f32.mrf.mxu1 }
 0x1ba   :  { %v308_v42 = vmax.f32 %v306_v38, %v307_v40  ;;  %v300_v43 = vrot.slane %v299_v41, 1 }
 0x1bc   :  { %v310_v44 = vsub.f32 %v451_v29, %v308_v42  ;;  %v301_v45 = vmax.f32 %v299_v41, %v300_v43 }
 0x1be   :  { %v313_v46 = vmul.f32 1.442695, %v310_v44  ;;  %v309_v47 = vsub.f32 %v206_v32, %v301_v45 }
 0x1c0   :  { %468 = vpow2.f32 %v313_v46  ;;  %v311_v48 = vmul.f32 1.442695, %v309_v47 }
 0x1c2   :  { %470 = vpow2.f32 %v311_v48 }
 0x1cd   :  { %v469_v49 = vpop.eup %468 }
 0x1ce   :  { %v322_v50 = vsel %vm294_vm2, %v469_v49, 0.0 }
 0x1cf   :  { %v471_v51 = vpop.eup %470  ;;  %v323_v52 = vrot.slane %v322_v50, 4 }
 0x1d0   :  { %v315_v53 = vsel %vm294_vm2, %v471_v51, 0.0 }
 0x1d1   :  { %v324_v54 = vadd.f32 %v323_v52, %v322_v50  ;;  %v316_v55 = vrot.slane %v315_v53, 4 }
 0x1d3   :  { %v325_v56 = vrot.slane %v324_v54, 2  ;;  %v317_v57 = vadd.f32 %v316_v55, %v315_v53 }
 0x1d5   :  { %v318_v58 = vrot.slane %v317_v57, 2  ;;  %v326_v59 = vadd.f32 %v325_v56, %v324_v54 }
 0x1d7   :  { %v327_v60 = vrot.slane %v326_v59, 1  ;;  %v319_v61 = vadd.f32 %v318_v58, %v317_v57 }
 0x1d9   :  { %v328_v62 = vadd.f32 %v327_v60, %v326_v59  ;;  %v320_v63 = vrot.slane %v319_v61, 1 }
 0x1db   :  { %472 = vrcp.f32 %v328_v62  ;;  %v321_v0 = vadd.f32 %v320_v63, %v319_v61 }
 0x1dd   :  { %474 = vrcp.f32 %v321_v0 }
 0x1e8   :  { %v473_v1 = vpop.eup %472 }
 0x1e9   :  { %v332_v3 = vmul.f32 %v473_v1, %v469_v49 }
 0x1ea   :  { %v475_v4 = vpop.eup %474 }
 0x1eb   :  { %v334_v5 = vmul.f32 %v462_v2, %v332_v3  ;;  %v331_v6 = vmul.f32 %v475_v4, %v471_v51 }
 0x1ed   :  { %v342_v8 = vsel %vm294_vm2, %v334_v5, 0.0  ;;  %v333_v9 = vmul.f32 %v331_v6, %v285_v7 }
 0x1ee   :  { %v343_v10 = vrot.slane %v342_v8, 4 }
 0x1ef   :  { %v335_v11 = vsel %vm294_vm2, %v333_v9, 0.0 }
 0x1f0   :  { %v344_v12 = vadd.f32 %v343_v10, %v342_v8  ;;  %v336_v13 = vrot.slane %v335_v11, 4 }
 0x1f2   :  { %v345_v14 = vrot.slane %v344_v12, 2  ;;  %v337_v15 = vadd.f32 %v336_v13, %v335_v11 }
 0x1f4   :  { %v346_v16 = vadd.f32 %v345_v14, %v344_v12  ;;  %v338_v17 = vrot.slane %v337_v15, 2 }
 0x1f6   :  { %v347_v18 = vrot.slane %v346_v16, 1  ;;  %v339_v19 = vadd.f32 %v338_v17, %v337_v15 }
 0x1f8   :  { %v348_v21 = vadd.f32 %v347_v18, %v346_v16  ;;  %v340_v22 = vrot.slane %v339_v19, 1 }
 0x1fa   :  { %v341_v23 = vadd.f32 %v340_v22, %v339_v19  ;;  %v357_v24 = vadd.f32 %v387_v20, %v348_v21 }
 0x1fc   :  { %v356_v25 = vadd.f32 %v387_v20, %v341_v23  ;;  %v360_v26 = vrot.slane %v357_v24, 7 }
 0x1fe   :  { %v362_v27 = vsel %vm361_vm3, %v360_v26, %v356_v25 }
 0x1ff   :  { %365 = vst.msk [vmem:[#allocation2] sm:$0x3] %vm364_vm4, %v362_v27 }
 0x200   :  { %487 = shalt.err (!%p484_p4)
}
 0x201   :  { %375 = dma.vmem_to_hbm [thread:$0]  %s373_s17, 32, %s627_s6, [#allocation3]  }
 0x202   :  { %496 = dma.done.wait [#allocation3], 32  }
 0x203   :  { %497 = vsyncadd [#allocation3], 4294967264 }
 0x204   :  { %379 = vsyncpa [#allocation3], 1 }

</bundles_post_ra>
